<compile_context>
chip_gen: v7x
topology: tpu7x:2x2x1
jax: 0.10.0
libtpu: 0.0.40
codegen_flags: <defaults>
</compile_context>

<pallas_src>
import functools

import jax
import jax.numpy as jnp
from jax.experimental import pallas as pl
from jax.experimental.pallas import tpu as pltpu


def _flash_sdpa_kernel(q_ref, k_ref, v_ref, o_ref, m_sc, l_sc, acc_sc,
                       *, inv_temperature):
    """One (batch, q-tile, kv-tile) grid step.

    q_ref : (H, tq, D)   k_ref, v_ref : (H, tk, D)   o_ref : (H, tq, D)
    m_sc, l_sc : (H, tq, 1) f32    acc_sc : (H, tq, D) f32
    """
    kv = pl.program_id(2)

    @pl.when(kv == 0)
    def _init():
        m_sc[...] = jnp.full_like(m_sc, -jnp.inf)
        l_sc[...] = jnp.zeros_like(l_sc)
        acc_sc[...] = jnp.zeros_like(acc_sc)

    q = q_ref[...]                       # (H, tq, D), input dtype
    k = k_ref[...]                       # (H, tk, D)
    v = v_ref[...]                       # (H, tk, D)

    # Batched logits for all heads at once; contracts the last dims directly
    # (no explicit k transpose).  f32 accumulation on the MXU; the temperature
    # scale is folded into the f32 logits so it is exact even for bf16 q.
    s = jnp.einsum('hqd,hkd->hqk', q, k,
                   preferred_element_type=jnp.float32)       # (H, tq, tk) f32
    s = s * jnp.float32(inv_temperature)

    # Online (streaming) softmax update.
    m_prev = m_sc[...]                                        # (H, tq, 1)
    m_new = jnp.maximum(m_prev, jnp.max(s, axis=-1, keepdims=True))
    alpha = jnp.exp(m_prev - m_new)                           # (H, tq, 1)
    p = jnp.exp(s - m_new)                                    # (H, tq, tk) f32

    l_sc[...] = alpha * l_sc[...] + jnp.sum(p, axis=-1, keepdims=True)
    # P.V on the MXU in the value dtype (bf16 when inputs are bf16), f32 acc.
    acc_sc[...] = alpha * acc_sc[...] + jnp.einsum(
        'hqk,hkd->hqd', p.astype(v.dtype), v,
        preferred_element_type=jnp.float32)                   # (H, tq, D) f32
    m_sc[...] = m_new

    # Dropout is identity in eval mode.

    @pl.when(kv == pl.num_programs(2) - 1)
    def _finalize():
        # Normalize the context (H*N*D multiplies), not the probabilities.
        inv_l = pl.reciprocal(l_sc[...], approx=True)         # EUP slot
        o_ref[...] = (acc_sc[...] * inv_l).astype(o_ref.dtype)


def _pick_tile(n, max_tile):
    """Largest power-of-two tile <= max_tile that divides n (>=8 if possible)."""
    t = max_tile
    while t >= 8:
        if n % t == 0:
            return t
        t //= 2
    return n  # fall back to one full-length tile (small / ragged N)


def scaled_dot_product_attention(q, k, v, *, temperature,
                                 block_q=None, block_k=None):
    """q, k, v: (B, H, N, D). Returns softmax(q k^T / temperature) v, (B, H, N, D)."""
    B, H, N, D = q.shape
    assert k.shape == (B, H, N, D) and v.shape == (B, H, N, D)

    # Nk tile feeds the 256-wide MXU free dim; Nq tile 128 keeps the parallel
    # query axis long enough to occupy both v7x TensorCores at small batch.
    tq = block_q if block_q is not None else _pick_tile(N, 128)
    tk = block_k if block_k is not None else _pick_tile(N, 256)
    assert N % tq == 0 and N % tk == 0, "tile must divide sequence length"

    kernel = functools.partial(_flash_sdpa_kernel,
                               inv_temperature=1.0 / float(temperature))

    q_spec = pl.BlockSpec((pl.Squeezed(), H, tq, D), lambda b, i, j: (b, 0, i, 0))
    kv_spec = pl.BlockSpec((pl.Squeezed(), H, tk, D), lambda b, i, j: (b, 0, j, 0))
    o_spec = pl.BlockSpec((pl.Squeezed(), H, tq, D), lambda b, i, j: (b, 0, i, 0))

    return pl.pallas_call(
        kernel,
        out_shape=jax.ShapeDtypeStruct((B, H, N, D), q.dtype),
        grid_spec=pltpu.PrefetchScalarGridSpec(
            num_scalar_prefetch=0,
            grid=(B, N // tq, N // tk),
            in_specs=[q_spec, kv_spec, kv_spec],
            out_specs=o_spec,
            scratch_shapes=[
                pltpu.VMEM((H, tq, 1), jnp.float32),   # running max
                pltpu.VMEM((H, tq, 1), jnp.float32),   # running denom
                pltpu.VMEM((H, tq, D), jnp.float32),   # context accumulator
            ],
        ),
        compiler_params=pltpu.CompilerParams(
            dimension_semantics=("parallel", "parallel", "arbitrary")),
    )(q, k, v)


def reference_sdpa(q, k, v, temperature):
    """Pure-JAX reference mirroring the PyTorch forward (eval mode, no mask)."""
    logits = jnp.einsum('bhqd,bhkd->bhqk',
                        q.astype(jnp.float32) / temperature,
                        k.astype(jnp.float32))
    attn = jax.nn.softmax(logits, axis=-1)
    return jnp.einsum('bhqk,bhkd->bhqd', attn, v.astype(jnp.float32))


if __name__ == "__main__":
    # Small, module-consistent shapes: q, k, v are (B, H, N, D).
    B, H, N, D = 2, 4, 8, 32
    temperature = float(D) ** 0.5

    key = jax.random.PRNGKey(0)
    kq, kk, kv = jax.random.split(key, 3)
    q = jax.random.normal(kq, (B, H, N, D), dtype=jnp.float32)
    k = jax.random.normal(kk, (B, H, N, D), dtype=jnp.float32)
    v = jax.random.normal(kv, (B, H, N, D), dtype=jnp.float32)

    # f32 path (approx reciprocal -> slightly looser tolerance than exact div).
    out = scaled_dot_product_attention(q, k, v, temperature=temperature)
    out = jax.block_until_ready(out)
    ref = reference_sdpa(q, k, v, temperature)
    assert out.shape == (B, H, N, D)
    err = jnp.max(jnp.abs(out - ref))
    assert jnp.allclose(out, ref, atol=2e-3, rtol=2e-3), f"f32 max abs err = {err}"

    # bf16 path: both MXU matmuls in bf16 with f32 accumulation / f32 softmax.
    qb, kb, vb = (x.astype(jnp.bfloat16) for x in (q, k, v))
    out_bf16 = scaled_dot_product_attention(qb, kb, vb, temperature=temperature)
    out_bf16 = jax.block_until_ready(out_bf16)
    ref_bf16 = reference_sdpa(qb.astype(jnp.float32), kb.astype(jnp.float32),
                              vb.astype(jnp.float32), temperature)
    err_bf16 = jnp.max(jnp.abs(out_bf16.astype(jnp.float32) - ref_bf16))
    assert jnp.allclose(out_bf16.astype(jnp.float32), ref_bf16,
                        atol=5e-2, rtol=5e-2), f"bf16 max abs err = {err_bf16}"

    # Exercise the multi-tile (online-softmax) path: N large enough to split
    # into several query and KV tiles.
    N2 = 512
    kq2, kk2, kv2 = jax.random.split(jax.random.PRNGKey(1), 3)
    q2 = jax.random.normal(kq2, (1, H, N2, D), dtype=jnp.float32)
    k2 = jax.random.normal(kk2, (1, H, N2, D), dtype=jnp.float32)
    v2 = jax.random.normal(kv2, (1, H, N2, D), dtype=jnp.float32)
    out2 = scaled_dot_product_attention(q2, k2, v2, temperature=temperature)
    out2 = jax.block_until_ready(out2)
    ref2 = reference_sdpa(q2, k2, v2, temperature)
    err2 = jnp.max(jnp.abs(out2 - ref2))
    assert jnp.allclose(out2, ref2, atol=2e-3, rtol=2e-3), f"tiled max abs err = {err2}"

    print("KERNEL_OK")
</pallas_src>

<mosaic_0001>
module attributes {stable_mosaic.version = 11 : i64} {
  func.func @_flash_sdpa_kernel(%arg0: i32, %arg1: i32, %arg2: i32, %arg3: memref<1x4x8x32xf32, #tpu.memory_space<vmem>>, %arg4: memref<1x4x8x32xf32, #tpu.memory_space<vmem>>, %arg5: memref<1x4x8x32xf32, #tpu.memory_space<vmem>>, %arg6: memref<1x4x8x32xf32, #tpu.memory_space<vmem>>, %arg7: memref<4x8x1xf32, #tpu.memory_space<vmem>>, %arg8: memref<4x8x1xf32, #tpu.memory_space<vmem>>, %arg9: memref<4x8x32xf32, #tpu.memory_space<vmem>>) attributes {dimension_semantics = [#tpu.dimension_semantics<parallel>, #tpu.dimension_semantics<parallel>, #tpu.dimension_semantics<arbitrary>], iteration_bounds = array<i64: 2, 1, 1>, scalar_prefetch = 0 : i64, scratch_operands = 3 : i64, tpu.core_type = #tpu.core_type<tc>, window_params = [{transform_indices = @transform_0, window_bounds = array<i64: 1, 4, 8, 32>}, {transform_indices = @transform_1, window_bounds = array<i64: 1, 4, 8, 32>}, {transform_indices = @transform_2, window_bounds = array<i64: 1, 4, 8, 32>}, {transform_indices = @transform_3, window_bounds = array<i64: 1, 4, 8, 32>}]} {
    %c0_i32 = arith.constant 0 : i32
    %0 = arith.cmpi eq, %arg2, %c0_i32 : i32
    %1 = arith.extui %0 : i1 to i32
    %c0_i32_0 = arith.constant 0 : i32
    %2 = arith.cmpi ne, %1, %c0_i32_0 : i32
    scf.if %2 {
      %cst_36 = arith.constant 0xFF800000 : f32
      %37 = vector.broadcast %cst_36 : f32 to vector<4x8x1xf32>
      %c0_37 = arith.constant 0 : index
      %c0_38 = arith.constant 0 : index
      %c0_39 = arith.constant 0 : index
      %38 = vector.load %arg7[%c0_37, %c0_38, %c0_39] : memref<4x8x1xf32, #tpu.memory_space<vmem>>, vector<4x8x1xf32>
      tpu.vector_store %arg7[%c0_37, %c0_38, %c0_39], %37 {strides = array<i32>} : memref<4x8x1xf32, #tpu.memory_space<vmem>>, vector<4x8x1xf32>,
      %cst_40 = arith.constant 0.000000e+00 : f32
      %39 = vector.broadcast %cst_40 : f32 to vector<4x8x1xf32>
      %c0_41 = arith.constant 0 : index
      %c0_42 = arith.constant 0 : index
      %c0_43 = arith.constant 0 : index
      %40 = vector.load %arg8[%c0_41, %c0_42, %c0_43] : memref<4x8x1xf32, #tpu.memory_space<vmem>>, vector<4x8x1xf32>
      tpu.vector_store %arg8[%c0_41, %c0_42, %c0_43], %39 {strides = array<i32>} : memref<4x8x1xf32, #tpu.memory_space<vmem>>, vector<4x8x1xf32>,
      %cst_44 = arith.constant 0.000000e+00 : f32
      %41 = vector.broadcast %cst_44 : f32 to vector<4x8x32xf32>
      %c0_45 = arith.constant 0 : index
      %c0_46 = arith.constant 0 : index
      %c0_47 = arith.constant 0 : index
      %42 = vector.load %arg9[%c0_45, %c0_46, %c0_47] : memref<4x8x32xf32, #tpu.memory_space<vmem>>, vector<4x8x32xf32>
      tpu.vector_store %arg9[%c0_45, %c0_46, %c0_47], %41 {strides = array<i32>} : memref<4x8x32xf32, #tpu.memory_space<vmem>>, vector<4x8x32xf32>,
    } else {
    }
    %c0 = arith.constant 0 : index
    %c0_1 = arith.constant 0 : index
    %c0_2 = arith.constant 0 : index
    %c0_3 = arith.constant 0 : index
    %3 = vector.load %arg3[%c0, %c0_1, %c0_2, %c0_3] : memref<1x4x8x32xf32, #tpu.memory_space<vmem>>, vector<1x4x8x32xf32>
    %4 = vector.shape_cast %3 : vector<1x4x8x32xf32> to vector<4x8x32xf32>
    %c0_4 = arith.constant 0 : index
    %c0_5 = arith.constant 0 : index
    %c0_6 = arith.constant 0 : index
    %c0_7 = arith.constant 0 : index
    %5 = vector.load %arg4[%c0_4, %c0_5, %c0_6, %c0_7] : memref<1x4x8x32xf32, #tpu.memory_space<vmem>>, vector<1x4x8x32xf32>
    %6 = vector.shape_cast %5 : vector<1x4x8x32xf32> to vector<4x8x32xf32>
    %c0_8 = arith.constant 0 : index
    %c0_9 = arith.constant 0 : index
    %c0_10 = arith.constant 0 : index
    %c0_11 = arith.constant 0 : index
    %7 = vector.load %arg5[%c0_8, %c0_9, %c0_10, %c0_11] : memref<1x4x8x32xf32, #tpu.memory_space<vmem>>, vector<1x4x8x32xf32>
    %8 = vector.shape_cast %7 : vector<1x4x8x32xf32> to vector<4x8x32xf32>
    "tpu.trace_start"() <{level = 10 : i32, message = "hqd,hkd->hqk"}> : () -> ()
    %cst = arith.constant dense<0.000000e+00> : vector<4x8x8xf32>
    %9 = tpu.matmul %4, %6, %cst {dimension_numbers = #tpu.dot_dimension_numbers<[2], [2], [1], [1], [0, 0, 0, 1, 1, 1], [0], [0]>} : vector<4x8x32xf32>, vector<4x8x32xf32>, vector<4x8x8xf32> -> vector<4x8x8xf32>
    "tpu.trace_stop"() : () -> ()
    %cst_12 = arith.constant 0.176776692 : f32
    %10 = vector.broadcast %cst_12 : f32 to vector<4x8x8xf32>
    %11 = arith.mulf %9, %10 : vector<4x8x8xf32>
    %c0_13 = arith.constant 0 : index
    %c0_14 = arith.constant 0 : index
    %c0_15 = arith.constant 0 : index
    %12 = vector.load %arg7[%c0_13, %c0_14, %c0_15] : memref<4x8x1xf32, #tpu.memory_space<vmem>>, vector<4x8x1xf32>
    %cst_16 = arith.constant dense<0xFF800000> : vector<4x8xf32>
    %13 = vector.multi_reduction <maximumf>, %11, %cst_16 [2] : vector<4x8x8xf32> to vector<4x8xf32>
    %14 = vector.shape_cast %13 : vector<4x8xf32> to vector<4x8x1xf32>
    %15 = arith.maximumf %12, %14 : vector<4x8x1xf32>
    %16 = arith.subf %12, %15 : vector<4x8x1xf32>
    %17 = math.exp %16 : vector<4x8x1xf32>
    %18 = vector.broadcast %15 : vector<4x8x1xf32> to vector<4x8x8xf32>
    %19 = arith.subf %11, %18 : vector<4x8x8xf32>
    %20 = math.exp %19 : vector<4x8x8xf32>
    %c0_17 = arith.constant 0 : index
    %c0_18 = arith.constant 0 : index
    %c0_19 = arith.constant 0 : index
    %21 = vector.load %arg8[%c0_17, %c0_18, %c0_19] : memref<4x8x1xf32, #tpu.memory_space<vmem>>, vector<4x8x1xf32>
    %22 = arith.mulf %17, %21 : vector<4x8x1xf32>
    %cst_20 = arith.constant dense<0.000000e+00> : vector<4x8xf32>
    %23 = vector.multi_reduction <add>, %20, %cst_20 [2] : vector<4x8x8xf32> to vector<4x8xf32>
    %24 = vector.shape_cast %23 : vector<4x8xf32> to vector<4x8x1xf32>
    %25 = arith.addf %22, %24 : vector<4x8x1xf32>
    %c0_21 = arith.constant 0 : index
    %c0_22 = arith.constant 0 : index
    %c0_23 = arith.constant 0 : index
    %26 = vector.load %arg8[%c0_21, %c0_22, %c0_23] : memref<4x8x1xf32, #tpu.memory_space<vmem>>, vector<4x8x1xf32>
    tpu.vector_store %arg8[%c0_21, %c0_22, %c0_23], %25 {strides = array<i32>} : memref<4x8x1xf32, #tpu.memory_space<vmem>>, vector<4x8x1xf32>,
    %c0_24 = arith.constant 0 : index
    %c0_25 = arith.constant 0 : index
    %c0_26 = arith.constant 0 : index
    %27 = vector.load %arg9[%c0_24, %c0_25, %c0_26] : memref<4x8x32xf32, #tpu.memory_space<vmem>>, vector<4x8x32xf32>
    %28 = vector.broadcast %17 : vector<4x8x1xf32> to vector<4x8x32xf32>
    %29 = arith.mulf %28, %27 : vector<4x8x32xf32>
    "tpu.trace_start"() <{level = 10 : i32, message = "hqk,hkd->hqd"}> : () -> ()
    %cst_27 = arith.constant dense<0.000000e+00> : vector<4x8x32xf32>
    %30 = tpu.matmul %20, %8, %cst_27 {dimension_numbers = #tpu.dot_dimension_numbers<[2], [1], [1], [2], [0, 0, 0, 1, 1, 2], [0], [0]>} : vector<4x8x8xf32>, vector<4x8x32xf32>, vector<4x8x32xf32> -> vector<4x8x32xf32>
    "tpu.trace_stop"() : () -> ()
    %31 = arith.addf %29, %30 : vector<4x8x32xf32>
    %c0_28 = arith.constant 0 : index
    %c0_29 = arith.constant 0 : index
    %c0_30 = arith.constant 0 : index
    %32 = vector.load %arg9[%c0_28, %c0_29, %c0_30] : memref<4x8x32xf32, #tpu.memory_space<vmem>>, vector<4x8x32xf32>
    tpu.vector_store %arg9[%c0_28, %c0_29, %c0_30], %31 {strides = array<i32>} : memref<4x8x32xf32, #tpu.memory_space<vmem>>, vector<4x8x32xf32>,
    %c0_31 = arith.constant 0 : index
    %c0_32 = arith.constant 0 : index
    %c0_33 = arith.constant 0 : index
    %33 = vector.load %arg7[%c0_31, %c0_32, %c0_33] : memref<4x8x1xf32, #tpu.memory_space<vmem>>, vector<4x8x1xf32>
    tpu.vector_store %arg7[%c0_31, %c0_32, %c0_33], %15 {strides = array<i32>} : memref<4x8x1xf32, #tpu.memory_space<vmem>>, vector<4x8x1xf32>,
    %c0_i32_34 = arith.constant 0 : i32
    %34 = arith.cmpi eq, %arg2, %c0_i32_34 : i32
    %35 = arith.extui %34 : i1 to i32
    %c0_i32_35 = arith.constant 0 : i32
    %36 = arith.cmpi ne, %35, %c0_i32_35 : i32
    scf.if %36 {
      %c0_36 = arith.constant 0 : index
      %c0_37 = arith.constant 0 : index
      %c0_38 = arith.constant 0 : index
      %37 = vector.load %arg8[%c0_36, %c0_37, %c0_38] : memref<4x8x1xf32, #tpu.memory_space<vmem>>, vector<4x8x1xf32>
      %38 = tpu.reciprocal %37 {approx = true} : vector<4x8x1xf32> -> vector<4x8x1xf32>
      %c0_39 = arith.constant 0 : index
      %c0_40 = arith.constant 0 : index
      %c0_41 = arith.constant 0 : index
      %39 = vector.load %arg9[%c0_39, %c0_40, %c0_41] : memref<4x8x32xf32, #tpu.memory_space<vmem>>, vector<4x8x32xf32>
      %40 = vector.broadcast %38 : vector<4x8x1xf32> to vector<4x8x32xf32>
      %41 = arith.mulf %39, %40 : vector<4x8x32xf32>
      %c0_42 = arith.constant 0 : index
      %c0_43 = arith.constant 0 : index
      %c0_44 = arith.constant 0 : index
      %c0_45 = arith.constant 0 : index
      %42 = vector.load %arg6[%c0_42, %c0_43, %c0_44, %c0_45] : memref<1x4x8x32xf32, #tpu.memory_space<vmem>>, vector<1x4x8x32xf32>
      %43 = vector.shape_cast %42 : vector<1x4x8x32xf32> to vector<4x8x32xf32>
      %44 = vector.shape_cast %41 : vector<4x8x32xf32> to vector<1x4x8x32xf32>
      tpu.vector_store %arg6[%c0_42, %c0_43, %c0_44, %c0_45], %44 {strides = array<i32>} : memref<1x4x8x32xf32, #tpu.memory_space<vmem>>, vector<1x4x8x32xf32>,
    } else {
    }
    return
  }
  func.func @transform_0(%arg0: i32, %arg1: i32, %arg2: i32) -> (i32, i32, i32, i32) {
    %c0_i32 = arith.constant 0 : i32
    %c0_i32_0 = arith.constant 0 : i32
    %c0_i32_1 = arith.constant 0 : i32
    return %arg0, %c0_i32, %arg1, %c0_i32_0 : i32, i32, i32, i32
  }
  func.func @transform_1(%arg0: i32, %arg1: i32, %arg2: i32) -> (i32, i32, i32, i32) {
    %c0_i32 = arith.constant 0 : i32
    %c0_i32_0 = arith.constant 0 : i32
    %c0_i32_1 = arith.constant 0 : i32
    return %arg0, %c0_i32, %arg2, %c0_i32_0 : i32, i32, i32, i32
  }
  func.func @transform_2(%arg0: i32, %arg1: i32, %arg2: i32) -> (i32, i32, i32, i32) {
    %c0_i32 = arith.constant 0 : i32
    %c0_i32_0 = arith.constant 0 : i32
    %c0_i32_1 = arith.constant 0 : i32
    return %arg0, %c0_i32, %arg2, %c0_i32_0 : i32, i32, i32, i32
  }
  func.func @transform_3(%arg0: i32, %arg1: i32, %arg2: i32) -> (i32, i32, i32, i32) {
    %c0_i32 = arith.constant 0 : i32
    %c0_i32_0 = arith.constant 0 : i32
    %c0_i32_1 = arith.constant 0 : i32
    return %arg0, %c0_i32, %arg1, %c0_i32_0 : i32, i32, i32, i32
  }
}

</mosaic_0001>

<bundles_post_ra>
// kernel: tpu_custom_call.1
= control target key start
LH: loop header
LB: loop body
LE: loop exit
PB: predicated region body
PF: predicated region fallthrough
CT: control target
= control target key end

     0   :  { %s2059_s0 = inlined_call_operand.hbm [shape: f32[2,4,8,32], index: 0, kind: input, shape index: {}]   ;;  %s2060_s1 = inlined_call_operand.hbm [shape: f32[2,4,8,32], index: 1, kind: input, shape index: {}]   ;;  %s2061_s2 = inlined_call_operand.hbm [shape: f32[2,4,8,32], index: 2, kind: input, shape index: {}]   ;;  %s2062_s3 = inlined_call_operand.hbm [shape: f32[2,4,8,32], index: 3, kind: output, shape index: {}]  }
   0x1   :  { %2072 = sst [smem:[#allocation18_spill]] %s2060_s1 }
   0x2   :  { %8 = vsyncpa [#allocation6], 0 }
   0x3   :  { %10 = vsyncpa [#allocation6 + $0x1], 0 }
   0x4   :  { %11 = vsyncpa [#allocation9], 0 }
   0x5   :  { %13 = vsyncpa [#allocation9 + $0x1], 0 }
   0x6   :  { %14 = vsyncpa [#allocation7], 0 }
   0x7   :  { %16 = vsyncpa [#allocation7 + $0x1], 0  ;;  %s1665_s12 = smov 0   ;;  %s1667_s13 = smov 0  }
   0x8   :  { %s1669_s14 = smov 0   ;;  %s1671_s15 = smov 0  }
   0x9   :  { %s1673_s16 = smov 0   ;;  %s1675_s17 = smov 0  }
   0xa LB: > { %2073 = sst [smem:[#allocation15_spill]] %s1627_s16  ;;  %s1696_s18 = sadd.s32 4294967295, %s1631_s17   ;;  %s1631_s17 = sphi %s1675_s17, %s22_s17   ;;  %s1627_s16 = sphi %s1673_s16, %s2096_s16   ;;  %s1623_s15 = sphi %s1671_s15, %s2095_s15   ;;  %s1619_s14 = sphi %s1669_s14, %s2099_s14   ;;  %s1615_s13 = sphi %s1667_s13, %s2098_s13   ;;  %s1611_s12 = sphi %s1665_s12, %s2097_s12  }
   0xb   : > { %s1255_s19 = sadd.s32 4294967294, %s1631_s17   ;;  %s41_s20 = sadd.s32 1, %s1627_s16 }
   0xc   : > { %s50_s21 = sadd.s32 1, %s1619_s14  ;;  %p43_p0 = scmp.ge.s32.totalorder %s41_s20, 2 }
   0xd   : > { %p57_p1 = scmp.ne.s32.totalorder %s1619_s14, %s1615_s13  ;;  %p58_p2 = scmp.eq.s32.totalorder %s1631_s17, 0 }
   0xe   : > { %p63_p3 = scmp.ne.s32.totalorder %s1615_s13, %s1611_s12  ;;  %s2101_s20 = smov (%p43_p0, %s41_s20), 0 }
   0xf   : > { %2074 = sst [smem:[#allocation16_spill]] %s2101_s20  ;;  %p1708_p4 = por %p58_p2, %p57_p1 }
  0x10   : > { %p64_p5 = scmp.eq.s32.totalorder %s1696_s18, 0  ;;  %s45_s23 = ssub.s32 %s1627_s16, %s2101_s20 }
  0x11   : > { %p145_p6 = scmp.eq.s32.totalorder %s1696_s18, 1  ;;  %p48_p7 = scmp.eq.s32.totalorder %s45_s23, 0 }
  0x12   : > { %p1716_p8 = por %p64_p5, %p63_p3  ;;  %p151_p10 = scmp.eq.s32.totalorder %s1255_s19, 1 }
  0x13   : > { %p1720_p9 = por %p145_p6, %p57_p1  ;;  %p1371_p13 = scmp.lt.s32.totalorder %s1631_s17, 2 }
  0x14   : > { %s2076_s24 = scalar_select %p1716_p8, 1, 0 }
  0x15   : > { %s2077_s25 = scalar_select %p1720_p9, 1, 0 }
  0x16   : > { %s1725_s26 = scalar_select %p48_p7, %s1619_s14, %s50_s21  }
  0x17   : > { %p1727_p11 = por %p151_p10, %p63_p3  ;;  %s2065_s28 = sand.u32 1, %s1619_s14  }
  0x18   : > { %2078 = sst [smem:[#allocation17_spill]] %s1725_s26  ;;  %s1736_s29 = sshll.u32 %s2065_s28, 5 }
  0x19   : > { %s2079_s27 = scalar_select %p1727_p11, 1, 0 }
  0x1a   : > { %s1739_s30 = sshll.u32 %s1627_s16, 9  ;;  %p1743_p0 = pnand %p1371_p13, %p1708_p4 }
  0x1b   : > { %s193_s5 = sand.u32 1, %s1631_s17   ;;  %s2081_s1 = sld [smem:[#allocation18_spill]] }
  0x1c   : > { %s197_s9 = scalar_lea.vmem [#allocation8], %s1736_s29  ;;  %s1759_s11 = scalar_lea.sflag [#allocation9], %s193_s5 }
  0x1d   : > { %s205_s10 = sshll.u32 %s197_s9, 4  ;;  %p1765_p4 = pneg %p1743_p0  ;;  %s1756_s10 = int_to_ptr.vmem [resolvable:$true] %s205_s10 }
  0x21   : > { %s1752_s8 = scalar_lea.hbm %s2081_s1, %s1739_s30  ;;  %s1460_s6 = scalar_lea.hbm %s2081_s1, 1024 }
  0x22   : > { %s1455_s19 = scalar_lea.hbm %s1752_s8, 512  ;;  %p1461_p7 = scmp.lt.u32.totalorder %s1752_s8, %s2081_s1 }
  0x23   : > { %p1456_p3 = scmp.ne.s32.totalorder %s1752_s8, %s1455_s19  ;;  %p1462_p10 = scmp.lt.u32.totalorder %s1460_s6, %s1455_s19 }
  0x24   : > { %p1464_p12 = scmp.lt.u32.totalorder %s1455_s19, %s1752_s8 }
  0x25   : > { %p1458_p5 = pnand %p1765_p4, %p1456_p3  ;;  %p1463_p13 = por %p1462_p10, %p1461_p7 }
  0x27   : > { %p1459_p6 = pneg %p1458_p5  ;;  %p1465_p1 = por %p1464_p12, %p1463_p13 }
  0x29   : > { %p1466_p2 = pnand %p1465_p1, %p1459_p6 }
  0x2b   : > { %1469 = shalt.err (!%p1466_p2)
}
  0x2c   : > { %s1470_s5 = scalar_lea.vmem %s1756_s10, 512  ;;  %s1633_s22 = smov [#allocation8]  }
  0x2d   : > { %p1471_p3 = scmp.ne.s32.totalorder %s1756_s10, %s1470_s5  ;;  %s1475_s23 = sshll.u32 %s1633_s22, 4  ;;  %s1476_s23 = int_to_ptr.vmem [resolvable:$false] %s1475_s23 }
  0x2e   : > { %s1477_s7 = scalar_lea.vmem %s1476_s23, 1024  ;;  %p1478_p9 = scmp.lt.s32.totalorder %s1756_s10, %s1476_s23 }
  0x2f   : > { %p1473_p5 = pnand %p1471_p3, %p1765_p4  ;;  %p1479_p8 = scmp.lt.s32.totalorder %s1477_s7, %s1470_s5 }
  0x31   : > { %p1474_p11 = pneg %p1473_p5  ;;  %p1480_p7 = por %p1479_p8, %p1478_p9 }
  0x33   : > { %p1481_p10 = pnand %p1480_p7, %p1474_p11 }
  0x35   : > { %1484 = shalt.err (!%p1481_p10)
}
  0x36   : > { %s2066_s19 = smov 128   ;;  %s2068_s6 = smov 8  }
  0x37   : > { %1363 = dma.hbm_to_vmem [thread:$0]  (!%p1743_p0), %s1752_s8, 512, %s1756_s10, %s1759_s11, %s2066_s19, %s2066_s19, %s2068_s6  }
  0x38   : > { %p2083_p8 = scmp.lt.s32.totalorder %s1631_s17, 3  ;;  %p2084_p9 = scmp.ge.s32.totalorder %s1631_s17, 1 }
  0x39   : > { %s1804_s23 = scalar_lea.hbm %s2059_s0, %s1739_s30  ;;  %s175_s7 = scalar_lea.vmem [#allocation5], %s1736_s29 }
  0x3a   : > { %p1796_p11 = pnand %p2084_p9, %p2083_p8  ;;  %s183_s28 = sshll.u32 %s175_s7, 4  ;;  %s1807_s28 = int_to_ptr.vmem [resolvable:$true] %s183_s28 }
  0x3b   : > { %s1813_s19 = scalar_lea.hbm %s2061_s2, %s1739_s30  ;;  %s2086_s6 = sand.u32 1, %s1619_s14  }
  0x3c   : > { %s2085_s9 = scalar_select %p1796_p11, 1, 0 }
  0x3d   : > { %s1817_s1 = scalar_lea.sflag [#allocation6], %s2086_s6  ;;  %s1485_s20 = scalar_lea.hbm %s1804_s23, 512 }
  0x3e   : > { %p1486_p12 = scmp.ne.s32.totalorder %s1804_s23, %s1485_s20  ;;  %s1490_s16 = scalar_lea.hbm %s2059_s0, 1024 }
  0x3f   : > { %p1491_p6 = scmp.lt.u32.totalorder %s1804_s23, %s2059_s0  ;;  %p1492_p13 = scmp.lt.u32.totalorder %s1490_s16, %s1485_s20 }
  0x40   : > { %p1488_p1 = pnand %p1486_p12, %p1765_p4  ;;  %p1494_p5 = scmp.lt.u32.totalorder %s1485_s20, %s1804_s23 }
  0x41   : > { %p1493_p3 = por %p1492_p13, %p1491_p6 }
  0x42   : > { %p1489_p2 = pneg %p1488_p1 }
  0x43   : > { %p1495_p7 = por %p1494_p5, %p1493_p3 }
  0x45   : > { %p1496_p10 = pnand %p1495_p7, %p1489_p2 }
  0x47   : > { %1499 = shalt.err (!%p1496_p10)
}
  0x48   : > { %s1500_s30 = scalar_lea.vmem %s1807_s28, 512  ;;  %s1636_s6 = smov [#allocation5]  }
  0x49   : > { %p1501_p8 = scmp.ne.s32.totalorder %s1807_s28, %s1500_s30  ;;  %s1505_s8 = sshll.u32 %s1636_s6, 4  ;;  %s1506_s8 = int_to_ptr.vmem [resolvable:$false] %s1505_s8 }
  0x4a   : > { %s1507_s26 = scalar_lea.vmem %s1506_s8, 1024  ;;  %p1508_p1 = scmp.lt.s32.totalorder %s1807_s28, %s1506_s8 }
  0x4b   : > { %p1503_p9 = pnand %p1501_p8, %p1765_p4  ;;  %p1509_p11 = scmp.lt.s32.totalorder %s1507_s26, %s1500_s30 }
  0x4d   : > { %p1504_p12 = pneg %p1503_p9  ;;  %p1510_p6 = por %p1509_p11, %p1508_p1 }
  0x4f   : > { %p1511_p13 = pnand %p1510_p6, %p1504_p12 }
  0x51   : > { %1514 = shalt.err (!%p1511_p13)
}
  0x52   : > { %s2087_s16 = smov 8   ;;  %s2088_s20 = smov 128  }
  0x53   : > { %1360 = dma.hbm_to_vmem [thread:$0]  (!%p1743_p0), %s1804_s23, 512, %s1807_s28, %s1817_s1, %s2088_s20, %s2088_s20, %s2087_s16  }
  0x54   : > { %s219_s10 = scalar_lea.vmem [#allocation10], %s1736_s29  ;;  %s1515_s22 = scalar_lea.hbm %s1813_s19, 512 }
  0x55   : > { %s227_s5 = sshll.u32 %s219_s10, 4  ;;  %p1516_p11 = scmp.ne.s32.totalorder %s1813_s19, %s1515_s22  ;;  %s1845_s5 = int_to_ptr.vmem [resolvable:$true] %s227_s5 }
  0x56   : > { %s1520_s6 = scalar_lea.hbm %s2061_s2, 1024  ;;  %p1521_p5 = scmp.lt.u32.totalorder %s1813_s19, %s2061_s2 }
  0x57   : > { %p1518_p2 = pnand %p1516_p11, %p1765_p4  ;;  %p1522_p7 = scmp.lt.u32.totalorder %s1520_s6, %s1515_s22 }
  0x58   : > { %p1524_p8 = scmp.lt.u32.totalorder %s1515_s22, %s1813_s19 }
  0x59   : > { %p1519_p3 = pneg %p1518_p2  ;;  %p1523_p10 = por %p1522_p7, %p1521_p5 }
  0x5b   : > { %p1525_p9 = por %p1524_p8, %p1523_p10 }
  0x5d   : > { %p1526_p12 = pnand %p1525_p9, %p1519_p3 }
  0x5f   : > { %1529 = shalt.err (!%p1526_p12)
}
  0x60   : > { %s1530_s1 = scalar_lea.vmem %s1845_s5, 512  ;;  %s1637_s28 = smov [#allocation10]  }
  0x61   : > { %p1531_p1 = scmp.ne.s32.totalorder %s1845_s5, %s1530_s1  ;;  %s1535_s29 = sshll.u32 %s1637_s28, 4  ;;  %s1536_s29 = int_to_ptr.vmem [resolvable:$false] %s1535_s29 }
  0x62   : > { %s1537_s23 = scalar_lea.vmem %s1536_s29, 1024  ;;  %p1538_p11 = scmp.lt.s32.totalorder %s1845_s5, %s1536_s29 }
  0x63   : > { %p1533_p6 = pnand %p1531_p1, %p1765_p4  ;;  %p1539_p2 = scmp.lt.s32.totalorder %s1537_s23, %s1530_s1 }
  0x65   : > { %p1534_p13 = pneg %p1533_p6  ;;  %p1540_p5 = por %p1539_p2, %p1538_p11 }
  0x67   : > { %p1541_p7 = pnand %p1540_p5, %p1534_p13 }
  0x69   : > { %1544 = shalt.err (!%p1541_p7)
}
  0x6a   : > { %1366 = dma.hbm_to_vmem [thread:$0]  (!%p1743_p0), %s1813_s19, 512, %s1845_s5, %s1759_s11, %s2088_s20, %s2088_s20, %s2087_s16  }
  0x6b   : > { %p2089_p4 = scmp.ne.s32.totalorder %s2085_s9, 0 }
  0x6c   : > { %s1875_s21 = sand.u32 (!%p2089_p4), 1, %s1615_s13   ;;  %p2090_p3 = scmp.ne.s32.totalorder (!%p2089_p4), %s2076_s24, 0 }
  0x6d   : > { %239 = sbr.rel (%p2089_p4) target bundleno = 949 (0x3b5), region = 32  ;;  %s1878_s10 = sshll.u32 (!%p2089_p4), %s1875_s21, 5 }
  0x6e   : > { %s242_s4 = scalar_lea.sflag (!%p2089_p4), [#allocation6], %s1875_s21  ;;  %s1882_s22 = scalar_lea.vmem (!%p2089_p4), [#allocation5], %s1878_s10 }
  0x74   : > { %1598 = dma.done.wait (%p2090_p3), %s242_s4, 512  }
  0x75   : > { %1600 = vsyncadd (%p2090_p3), %s242_s4, 4294966784  ;;  %s250_s11 = sand.u32 1, %s1696_s18   ;;  %s254_s9 = scalar_lea.vmem [#allocation8], %s1878_s10 }
  0x76   : > { %s251_s19 = scalar_lea.sflag [#allocation9], %s250_s11 }
  0x77   : > { %1602 = dma.done.wait (%p2090_p3), %s251_s19, 1024  }
  0x78   : > { %1604 = vsyncadd (%p2090_p3), %s251_s19, 4294966272  ;;  %vm309_vm0 = vcmask 261120   ;;  %v1638_v0 = vmov 0.0   ;;  %vm1639_vm1 = vmmov 0   ;;  %v318_v1 = vld [vmem:[%s254_s9] sm:$0xff]  ;;  %v319_v2 = vld [vmem:[%s254_s9 + $0x8] sm:$0xff] }
  0x79   : > { %1309 = vmatprep.subr.mxu0 %v1638_v0  ;;  %310 = vst.msk [vmem:[#allocation4] sm:$0xff] %vm309_vm0, %v1638_v0  ;;  %311 = vst.msk [vmem:[#allocation4 + $0x8] sm:$0xff] %vm309_vm0, %v1638_v0  ;;  %1311 = vmatprep.mubr.msk.f32.mxu0 %vm1639_vm1, %v1638_v0  ;;  %v314_v3 = vld [vmem:[%s1882_s22] sm:$0xff]  ;;  %v315_v4 = vld [vmem:[%s1882_s22 + $0x8] sm:$0xff]  ;;  %vm300_vm2 = vcmask 7168   ;;  %v1640_v9 = vmov -inf  }
  0x7a   : > { %312 = vst.msk [vmem:[#allocation4 + $0x10] sm:$0xff] %vm309_vm0, %v1638_v0  ;;  %313 = vst.msk [vmem:[#allocation4 + $0x18] sm:$0xff] %vm309_vm0, %v1638_v0  ;;  %1314 = vmatprep.subr.mxu1 %v1638_v0  ;;  %1316 = vmatprep.mubr.msk.f32.mxu1 %vm1639_vm1, %v1638_v0  ;;  %v320_v5 = vld [vmem:[%s254_s9 + $0x10] sm:$0xff]  ;;  %v321_v6 = vld [vmem:[%s254_s9 + $0x18] sm:$0xff]  ;;  %vm639_vm3 = vcmask 64512   ;;  %v1641_v26 = vmov 0  }
  0x7b   : > { %1310 = vmatpush3.xpose.msk.msra.mxu0 %vm309_vm0, %v318_v1  ;;  %1315 = vmatpush3.xpose.msk.msra.mxu1 %vm309_vm0, %v319_v2  ;;  %v316_v7 = vld [vmem:[%s1882_s22 + $0x10] sm:$0xff]  ;;  %v317_v8 = vld [vmem:[%s1882_s22 + $0x18] sm:$0xff]  ;;  %301 = vst.msk [vmem:[#allocation2] sm:$0xff] %vm300_vm2, %v1640_v9  ;;  %302 = vst.msk [vmem:[#allocation2 + $0x8] sm:$0xff] %vm300_vm2, %v1640_v9  ;;  %s263_s18 = scalar_lea.vmem [#allocation10], %s1878_s10  ;;  %s295_s24 = scalar_lea.vmem [#allocation11], %s1878_s10 }
  0x7c   : > { %1319 = vmatprep.subr.mxu0 %v1638_v0  ;;  %1324 = vmatprep.subr.mxu1 %v1638_v0  ;;  %303 = vst.msk [vmem:[#allocation2 + $0x10] sm:$0xff] %vm300_vm2, %v1640_v9  ;;  %304 = vst.msk [vmem:[#allocation2 + $0x18] sm:$0xff] %vm300_vm2, %v1640_v9  ;;  %v322_v43 = vld [vmem:[%s263_s18] sm:$0xff]  ;;  %v323_v44 = vld [vmem:[%s263_s18 + $0x8] sm:$0xff]  ;;  %s1119_s16 = sshll.u32 %s295_s24, 4  ;;  %s1292_s20 = sshll.u32 %s1623_s15, 9  ;;  %s2003_s16 = int_to_ptr.vmem [resolvable:$true] %s1119_s16 }
  0x7d   : > { %305 = vst.msk [vmem:[#allocation3] sm:$0xff] %vm300_vm2, %v1638_v0  ;;  %306 = vst.msk [vmem:[#allocation3 + $0x8] sm:$0xff] %vm300_vm2, %v1638_v0  ;;  %1429 = vset.pattern.permute.xlu0 %v1641_v26  ;;  %1430 = vset.pattern.permute.xlu1 %v1641_v26  ;;  %v324_v56 = vld [vmem:[%s263_s18 + $0x10] sm:$0xff]  ;;  %v325_v60 = vld [vmem:[%s263_s18 + $0x18] sm:$0xff]  ;;  %s2009_s30 = scalar_lea.hbm %s2062_s3, %s1292_s20  ;;  %s1105_s6 = scalar_lea.sflag [#allocation7], %s1875_s21 }
  0x7e   : > { %1312 = vmatmul.mubr.msk.f32.vlgmr.msra.gmra.mrb[0].mxu0 %vm309_vm0, %v314_v3  ;;  %1317 = vmatmul.mubr.msk.f32.vlgmr.msra.gmra.mrb[0].mxu1 %vm309_vm0, %v315_v4  ;;  %307 = vst.msk [vmem:[#allocation3 + $0x10] sm:$0xff] %vm300_vm2, %v1638_v0  ;;  %308 = vst.msk [vmem:[#allocation3 + $0x18] sm:$0xff] %vm300_vm2, %v1638_v0  ;;  %s1545_s8 = scalar_lea.vmem %s2003_s16, 512  ;;  %p2091_p10 = scmp.ne.s32.totalorder %s2077_s25, 0 }
  0x7f   : > { %1320 = vmatpush3.xpose.msk.msra.mxu0 %vm309_vm0, %v320_v5  ;;  %1321 = vmatprep.mubr.msk.f32.mxu0 %vm1639_vm1, %v1638_v0  ;;  %p1546_p0 = scmp.ne.s32.totalorder %s2003_s16, %s1545_s8  ;;  %s1642_s15 = smov [#allocation11]  }
  0x80   : > { %1325 = vmatpush3.xpose.msk.msra.mxu1 %vm309_vm0, %v321_v6  ;;  %1326 = vmatprep.mubr.msk.f32.mxu1 %vm1639_vm1, %v1638_v0  ;;  %s1549_s26 = sshll.u32 %s1642_s15, 4  ;;  %s1550_s26 = int_to_ptr.vmem [resolvable:$false] %s1549_s26 }
  0x81   : > { %1329 = vmatprep.subr.mxu0 %v1638_v0  ;;  %1334 = vmatprep.subr.mxu1 %v1638_v0  ;;  %p1547_p8 = pnand %p1546_p0, %p2091_p10  ;;  %s1551_s1 = scalar_lea.vmem %s1550_s26, 1024 }
  0x82   : > { %1322 = vmatmul.mubr.msk.f32.vlgmr.msra.gmra.mrb[2].mxu0 %vm309_vm0, %v316_v7  ;;  %v1948_v27 = vld [vmem:[#allocation2] sm:$0xff]  ;;  %v1953_v30 = vld [vmem:[#allocation2 + $0x8] sm:$0xff]  ;;  %p1552_p12 = scmp.lt.s32.totalorder %s2003_s16, %s1550_s26  ;;  %p1553_p1 = scmp.lt.s32.totalorder %s1551_s1, %s1545_s8 }
  0x83   : > { %1327 = vmatmul.mubr.msk.f32.vlgmr.msra.gmra.mrb[2].mxu1 %vm309_vm0, %v317_v8  ;;  %1331 = vmatprep.mubr.msk.f32.mxu0 %vm1639_vm1, %v1638_v0  ;;  %v1955_v31 = vld [vmem:[#allocation2 + $0x10] sm:$0xff]  ;;  %v1964_v37 = vld [vmem:[#allocation2 + $0x18] sm:$0xff]  ;;  %p1548_p9 = pneg %p1547_p8 }
  0x84   : > { %1336 = vmatprep.mubr.msk.f32.mxu1 %vm1639_vm1, %v1638_v0  ;;  %1330 = vmatpush3.msra.mxu0 %v322_v43  ;;  %p1554_p6 = por %p1553_p1, %p1552_p12 }
  0x85   : > { %1339 = vmatprep.subr.mxu0 %v1638_v0  ;;  %1335 = vmatpush3.msra.mxu1 %v323_v44 }
  0x86   : > { %1344 = vmatprep.subr.mxu1 %v1638_v0  ;;  %p1555_p13 = pnand %p1554_p6, %p1548_p9 }
 0x151   : > { %v399_v10 = vpop.f32.mrb[0].mxu0  ;;  %v475_v11 = vpop.f32.mrb[0].mxu1 }
 0x152   : > { %v631_v12 = vmul.f32 0.17677669, %v399_v10  ;;  %v1313_v13 = vpop.f32.mrb[1].mxu0  ;;  %v632_v14 = vmul.f32 0.17677669, %v475_v11  ;;  %v1318_v15 = vpop.f32.mrb[1].mxu1 }
 0x153   : > { %v700_v11 = vld [vmem:[#allocation3] sm:$0xff] }
 0x154   : > { %v640_v16 = vsel %vm639_vm3, %v631_v12, -inf  ;;  %v643_v19 = vsel %vm639_vm3, %v632_v14, -inf }
 0x155   : > { %641 = vmax.xlane.f32.xlu0 %v640_v16  ;;  %v551_v17 = vpop.f32.mrb[2].mxu0 }
 0x156   : > { %v633_v18 = vmul.f32 0.17677669, %v551_v17  ;;  %v1323_v20 = vpop.f32.mrb[3].mxu0  ;;  %v627_v21 = vpop.f32.mrb[2].mxu1 }
 0x157   : > { %v634_v22 = vmul.f32 0.17677669, %v627_v21  ;;  %v1328_v23 = vpop.f32.mrb[3].mxu1 }
 0x158   : > { %v646_v24 = vsel %vm639_vm3, %v633_v18, -inf }
 0x159   : > { %644 = vmax.xlane.f32.xlu0 %v643_v19  ;;  %647 = vmax.xlane.f32.xlu1 %v646_v24  ;;  %v649_v25 = vsel %vm639_vm3, %v634_v22, -inf }
 0x15d   : > { %650 = vmax.xlane.f32.xlu1 %v649_v25 }
 0x1e2   : > { %v642_v28 = vpop.xlane.xlu0 %641 }
 0x1e3   : > { %v1951_v29 = vmax.f32 %v1948_v27, %v642_v28 }
 0x1e5   : > { %v656_v32 = vsub.f32 %v1948_v27, %v1951_v29  ;;  %1057 = vst.msk [vmem:[#allocation2] sm:$0xff] %vm300_vm2, %v1951_v29  ;;  %670 = vperm.xlu0 %1429, %v1951_v29  }
 0x1e6   : > { %v645_v33 = vpop.xlane.xlu0 %644  ;;  %v648_v34 = vpop.xlane.xlu1 %647 }
 0x1e7   : > { %v653_v35 = vmax.f32 %v1953_v30, %v645_v33  ;;  %v654_v36 = vmax.f32 %v1955_v31, %v648_v34  ;;  %v660_v5 = vmul.f32 1.442695, %v656_v32 }
 0x1e9   : > { %v657_v38 = vsub.f32 %v1953_v30, %v653_v35  ;;  %1058 = vst.msk [vmem:[#allocation2 + $0x8] sm:$0xff] %vm300_vm2, %v653_v35  ;;  %675 = vperm.xlu1 %1430, %v653_v35   ;;  %v658_v39 = vsub.f32 %v1955_v31, %v654_v36  ;;  %1059 = vst.msk [vmem:[#allocation2 + $0x10] sm:$0xff] %vm300_vm2, %v654_v36  ;;  %v729_v35 = vld [vmem:[#allocation4] sm:$0xff] }
 0x1ea   : > { %v651_v40 = vpop.xlane.xlu1 %650 }
 0x1eb   : > { %v655_v41 = vmax.f32 %v1964_v37, %v651_v40  ;;  %v662_v3 = vmul.f32 1.442695, %v657_v38  ;;  %v730_v38 = vld [vmem:[#allocation4 + $0x8] sm:$0xff] }
 0x1ed   : > { %680 = vperm.xlu1 %1430, %v654_v36   ;;  %v659_v42 = vsub.f32 %v1964_v37, %v655_v41  ;;  %1060 = vst.msk [vmem:[#allocation2 + $0x18] sm:$0xff] %vm300_vm2, %v655_v41 }
 0x1ef   : > { %v666_v6 = vmul.f32 1.442695, %v659_v42 }
 0x1f1   : > { %685 = vperm.xlu1 %1430, %v655_v41  }
 0x264   : > { %v671_v45 = vpop.permute.xlu0 %670 }
 0x265   : > { %v688_v46 = vsub.f32 %v631_v12, %v671_v45  ;;  %v731_v45 = vld [vmem:[#allocation4 + $0x10] sm:$0xff] }
 0x267   : > { %v692_v47 = vmul.f32 1.442695, %v688_v46 }
 0x268   : > { %v676_v48 = vpop.permute.xlu1 %675 }
 0x269   : > { %1431 = vpow2.f32 %v692_v47  ;;  %v689_v49 = vsub.f32 %v632_v14, %v676_v48  ;;  %v701_v14 = vld [vmem:[#allocation3 + $0x8] sm:$0xff] }
 0x26b   : > { %v694_v50 = vmul.f32 1.442695, %v689_v49 }
 0x26c   : > { %v681_v51 = vpop.permute.xlu1 %680 }
 0x26d   : > { %1433 = vpow2.f32 %v694_v50  ;;  %v690_v52 = vsub.f32 %v633_v18, %v681_v51  ;;  %v702_v18 = vld [vmem:[#allocation3 + $0x10] sm:$0xff]  ;;  %v732_v50 = vld [vmem:[#allocation4 + $0x18] sm:$0xff] }
 0x26f   : > { %v696_v53 = vmul.f32 1.442695, %v690_v52 }
 0x270   : > { %v686_v54 = vpop.permute.xlu1 %685 }
 0x271   : > { %1435 = vpow2.f32 %v696_v53  ;;  %v691_v55 = vsub.f32 %v634_v22, %v686_v54  ;;  %v703_v22 = vld [vmem:[#allocation3 + $0x18] sm:$0xff] }
 0x273   : > { %v1432_v57 = vpop.eup %1431  ;;  %v698_v58 = vmul.f32 1.442695, %v691_v55 }
 0x274   : > { %1332 = vmatmul.mubr.msk.f32.vlgmr.msra.gmra.mrb[4].mxu0 %vm639_vm3, %v1432_v57  ;;  %v708_v59 = vsel %vm639_vm3, %v1432_v57, 0.0 }
 0x275   : > { %1437 = vpow2.f32 %v698_v58  ;;  %709 = vadd.xlane.f32.xlu1 %v708_v59  ;;  %1340 = vmatpush3.msra.mxu0 %v324_v56 }
 0x276   : > { %1341 = vmatprep.mubr.msk.f32.mxu0 %vm1639_vm1, %v1638_v0  ;;  %1439 = vpow2.f32 %v662_v3 }
 0x277   : > { %v1434_v61 = vpop.eup %1433  ;;  %1441 = vpow2.f32 %v660_v5 }
 0x278   : > { %1337 = vmatmul.mubr.msk.f32.vlgmr.msra.gmra.mrb[4].mxu1 %vm639_vm3, %v1434_v61  ;;  %v711_v62 = vsel %vm639_vm3, %v1434_v61, 0.0 }
 0x279   : > { %712 = vadd.xlane.f32.xlu0 %v711_v62  ;;  %1345 = vmatpush3.msra.mxu1 %v325_v60 }
 0x27a   : > { %1346 = vmatprep.mubr.msk.f32.mxu1 %vm1639_vm1, %v1638_v0  ;;  %v664_v0 = vmul.f32 1.442695, %v658_v39 }
 0x27b   : > { %v1436_v63 = vpop.eup %1435 }
 0x27c   : > { %1342 = vmatmul.mubr.msk.f32.vlgmr.msra.gmra.mrb[6].mxu0 %vm639_vm3, %v1436_v63  ;;  %v714_v1 = vsel %vm639_vm3, %v1436_v63, 0.0  ;;  %1443 = vpow2.f32 %v664_v0 }
 0x27d   : > { %715 = vadd.xlane.f32.xlu1 %v714_v1  ;;  %1445 = vpow2.f32 %v666_v6 }
 0x27f   : > { %v1438_v2 = vpop.eup %1437 }
 0x280   : > { %1347 = vmatmul.mubr.msk.f32.vlgmr.msra.gmra.mrb[6].mxu1 %vm639_vm3, %v1438_v2  ;;  %v717_v4 = vsel %vm639_vm3, %v1438_v2, 0.0  ;;  %v1440_v7 = vpop.eup %1439 }
 0x281   : > { %718 = vadd.xlane.f32.xlu1 %v717_v4  ;;  %v1442_v8 = vpop.eup %1441  ;;  %v705_v16 = vmul.f32 %v1440_v7, %v701_v14 }
 0x282   : > { %v704_v12 = vmul.f32 %v1442_v8, %v700_v11 }
 0x286   : > { %v1444_v9 = vpop.eup %1443 }
 0x287   : > { %v1446_v10 = vpop.eup %1445  ;;  %v706_v20 = vmul.f32 %v1444_v9, %v702_v18 }
 0x288   : > { %v707_v25 = vmul.f32 %v1446_v10, %v703_v22 }
 0x28f   : > { %740 = vperm.xlu0 %1429, %v1440_v7  }
 0x292   : > { %735 = vperm.xlu1 %1430, %v1442_v8  }
 0x296   : > { %745 = vperm.xlu1 %1430, %v1444_v9  }
 0x29a   : > { %750 = vperm.xlu1 %1430, %v1446_v10  }
 0x302   : > { %v710_v13 = vpop.xlane.xlu1 %709 }
 0x303   : > { %v720_v15 = vadd.f32 %v710_v13, %v704_v12 }
 0x305   : > { %725 = vst.msk [vmem:[#allocation3] sm:$0xff] %vm300_vm2, %v720_v15 }
 0x306   : > { %v713_v17 = vpop.xlane.xlu0 %712 }
 0x307   : > { %v721_v19 = vadd.f32 %v713_v17, %v705_v16 }
 0x309   : > { %726 = vst.msk [vmem:[#allocation3 + $0x8] sm:$0xff] %vm300_vm2, %v721_v19 }
 0x30a   : > { %v716_v21 = vpop.xlane.xlu1 %715 }
 0x30b   : > { %v722_v23 = vadd.f32 %v716_v21, %v706_v20 }
 0x30c   : > { %v1064_v24 = vld [vmem:[#allocation3] sm:$0xff] }
 0x30d   : > { %727 = vst.msk [vmem:[#allocation3 + $0x10] sm:$0xff] %vm300_vm2, %v722_v23  ;;  %1447 = vrcp.f32 %v1064_v24 }
 0x30e   : > { %v719_v26 = vpop.xlane.xlu1 %718  ;;  %v741_v39 = vpop.permute.xlu0 %740 }
 0x30f   : > { %v723_v27 = vadd.f32 %v719_v26, %v707_v25  ;;  %v754_v44 = vmul.f32 %v741_v39, %v730_v38 }
 0x310   : > { %v1065_v28 = vld [vmem:[#allocation3 + $0x8] sm:$0xff] }
 0x311   : > { %728 = vst.msk [vmem:[#allocation3 + $0x18] sm:$0xff] %vm300_vm2, %v723_v27  ;;  %1449 = vrcp.f32 %v1065_v28 }
 0x312   : > { %v736_v36 = vpop.permute.xlu1 %735 }
 0x313   : > { %v753_v37 = vmul.f32 %v736_v36, %v729_v35 }
 0x314   : > { %v1066_v29 = vld [vmem:[#allocation3 + $0x10] sm:$0xff] }
 0x315   : > { %1451 = vrcp.f32 %v1066_v29 }
 0x316   : > { %v746_v43 = vpop.permute.xlu1 %745 }
 0x317   : > { %v1448_v30 = vpop.eup %1447  ;;  %v755_v49 = vmul.f32 %v746_v43, %v731_v45 }
 0x318   : > { %1078 = vperm.xlu1 %1430, %v1448_v30   ;;  %v1067_v31 = vld [vmem:[#allocation3 + $0x18] sm:$0xff] }
 0x319   : > { %1453 = vrcp.f32 %v1067_v31 }
 0x31a   : > { %v751_v51 = vpop.permute.xlu1 %750 }
 0x31b   : > { %v1450_v32 = vpop.eup %1449  ;;  %v756_v55 = vmul.f32 %v751_v51, %v732_v50 }
 0x31c   : > { %1083 = vperm.xlu0 %1429, %v1450_v32  }
 0x31f   : > { %v1452_v33 = vpop.eup %1451 }
 0x320   : > { %1088 = vperm.xlu1 %1430, %v1452_v33  }
 0x323   : > { %v1454_v34 = vpop.eup %1453 }
 0x324   : > { %1093 = vperm.xlu0 %1429, %v1454_v34  }
 0x347   : > { %v826_v40 = vpop.f32.mrb[4].mxu0 }
 0x348   : > { %v1049_v41 = vadd.f32 %v826_v40, %v753_v37  ;;  %v1333_v42 = vpop.f32.mrb[5].mxu0 }
 0x34a   : > { %1053 = vst.msk [vmem:[#allocation4] sm:$0xff] %vm309_vm0, %v1049_v41 }
 0x34b   : > { %v899_v46 = vpop.f32.mrb[4].mxu1 }
 0x34c   : > { %v1050_v47 = vadd.f32 %v899_v46, %v754_v44  ;;  %v1338_v48 = vpop.f32.mrb[5].mxu1 }
 0x34e   : > { %1054 = vst.msk [vmem:[#allocation4 + $0x8] sm:$0xff] %vm309_vm0, %v1050_v47 }
 0x34f   : > { %v972_v52 = vpop.f32.mrb[6].mxu0 }
 0x350   : > { %v1051_v53 = vadd.f32 %v972_v52, %v755_v49  ;;  %v1343_v54 = vpop.f32.mrb[7].mxu0 }
 0x351   : > { %v1072_v59 = vld [vmem:[#allocation4] sm:$0xff] }
 0x352   : > { %1055 = vst.msk [vmem:[#allocation4 + $0x10] sm:$0xff] %vm309_vm0, %v1051_v53 }
 0x353   : > { %v1045_v56 = vpop.f32.mrb[6].mxu1 }
 0x354   : > { %v1052_v57 = vadd.f32 %v1045_v56, %v756_v55  ;;  %v1348_v58 = vpop.f32.mrb[7].mxu1 }
 0x355   : > { %v1073_v62 = vld [vmem:[#allocation4 + $0x8] sm:$0xff] }
 0x356   : > { %1056 = vst.msk [vmem:[#allocation4 + $0x18] sm:$0xff] %vm309_vm0, %v1052_v57 }
 0x359   : > { %v1074_v2 = vld [vmem:[#allocation4 + $0x10] sm:$0xff] }
 0x35d   : > { %v1075_v0 = vld [vmem:[#allocation4 + $0x18] sm:$0xff] }
 0x397   : > { %v1079_v60 = vpop.permute.xlu1 %1078 }
 0x398   : > { %v1096_v61 = vmul.f32 %v1079_v60, %v1072_v59 }
 0x39a   : > { %1100 = vst.msk [vmem:[%s295_s24] sm:$0xff] %vm309_vm0, %v1096_v61 }
 0x39b   : > { %v1084_v63 = vpop.permute.xlu0 %1083 }
 0x39c   : > { %v1097_v1 = vmul.f32 %v1084_v63, %v1073_v62 }
 0x39e   : > { %1101 = vst.msk [vmem:[%s295_s24 + $0x8] sm:$0xff] %vm309_vm0, %v1097_v1 }
 0x39f   : > { %v1089_v3 = vpop.permute.xlu1 %1088 }
 0x3a0   : > { %v1098_v4 = vmul.f32 %v1089_v3, %v1074_v2 }
 0x3a2   : > { %1102 = vst.msk [vmem:[%s295_s24 + $0x10] sm:$0xff] %vm309_vm0, %v1098_v4 }
 0x3a3   : > { %v1094_v5 = vpop.permute.xlu0 %1093 }
 0x3a4   : > { %v1099_v6 = vmul.f32 %v1094_v5, %v1075_v0 }
 0x3a6   : > { %1103 = vst.msk [vmem:[%s295_s24 + $0x18] sm:$0xff] %vm309_vm0, %v1099_v6 }
 0x3a7   : > { %1558 = shalt.err (!%p1555_p13)
}
 0x3a8   : > { %s1559_s28 = scalar_lea.hbm %s2009_s30, 512  ;;  %s1563_s10 = scalar_lea.hbm %s2062_s3, 1024 }
 0x3a9   : > { %p1560_p11 = scmp.ne.s32.totalorder %s2009_s30, %s1559_s28  ;;  %p1564_p7 = scmp.lt.u32.totalorder %s2009_s30, %s2062_s3 }
 0x3aa   : > { %p1565_p4 = scmp.lt.u32.totalorder %s1563_s10, %s1559_s28  ;;  %p1567_p0 = scmp.lt.u32.totalorder %s1559_s28, %s2009_s30 }
 0x3ab   : > { %p1561_p2 = pnand %p1560_p11, %p2091_p10 }
 0x3ac   : > { %p1566_p3 = por %p1565_p4, %p1564_p7 }
 0x3ad   : > { %p1562_p5 = pneg %p1561_p2 }
 0x3ae   : > { %p1568_p8 = por %p1567_p0, %p1566_p3 }
 0x3b0   : > { %p1569_p9 = pnand %p1568_p8, %p1562_p5 }
 0x3b2   : > { %1572 = shalt.err (!%p1569_p9)
}
 0x3b3   : > { %s1643_s11 = smov 128   ;;  %s1644_s19 = smov 8  }
 0x3b4   : > { %1355 = dma.vmem_to_hbm [thread:$0]  (%p2091_p10), %s2003_s16, 512, %s2009_s30, %s1105_s6, %s1643_s11, %s1643_s11, %s1644_s19  }
 0x3b5 PF: > { %s1134_s9 = sand.u32 1, %s1611_s12   ;;  %p2092_p12 = scmp.ne.s32.totalorder %s2079_s27, 0 }
 0x3b6   : > { %p2093_p1 = scmp.ge.s32.totalorder %s1631_s17, 2  ;;  %s1135_s18 = scalar_lea.sflag [#allocation7], %s1134_s9 }
 0x3b8   : > { %p1368_p6 = pnand %p2093_p1, %p2092_p12 }
 0x3ba   : > { %1606 = dma.done.wait (!%p1368_p6), %s1135_s18, 512  }
 0x3bb   : > { %1608 = vsyncadd (!%p1368_p6), %s1135_s18, 4294966784  ;;  %s22_s17 = sadd.s32 1, %s1631_s17   ;;  %s2094_s24 = sld [smem:[#allocation17_spill]] }
 0x3bc   : > { %p19_p13 = scmp.ge.s32.totalorder %s22_s17, 4   ;;  %s2095_s15 = sld [smem:[#allocation15_spill]] }
 0x3bd   : > { %s2096_s16 = sld [smem:[#allocation16_spill]]  ;;  %s2097_s12 = smov %s1615_s13 }
 0x3be   : > { %s2098_s13 = smov %s1619_s14  ;;  %21 = sbr.rel (!%p19_p13) target bundleno = 10 (0xa), region = 109 }
 0x3c1   : > { %s2099_s14 = smov %s2094_s24 }
 0x3c5   :  { %1140 = vsyncpa [#allocation6], 1 }
 0x3c6   :  { %1142 = vsyncpa [#allocation6 + $0x1], 1 }
 0x3c7   :  { %1143 = vsyncpa [#allocation9], 1 }
 0x3c8   :  { %1145 = vsyncpa [#allocation9 + $0x1], 1 }
 0x3c9   :  { %1146 = vsyncpa [#allocation7], 1 }
 0x3ca   :  { %1148 = vsyncpa [#allocation7 + $0x1], 1 }

</bundles_post_ra>
